<compile_context>
chip_gen: v6e
topology: v6e:2x2x1
jax: 0.10.0
libtpu: 0.0.40
codegen_flags: <defaults>
</compile_context>

<pallas_src>
import functools

import jax
import jax.numpy as jnp
from jax.experimental import pallas as pl
from jax.experimental.pallas import tpu as pltpu


def _round_up(n, m):
    return ((n + m - 1) // m) * m


def _vmem_capacity_bytes():
    try:
        return int(pltpu.get_tpu_info().vmem_capacity_bytes)
    except Exception:
        return 64 * 1024 * 1024  # conservative (v7x has 64 MiB per TC)


# ----------------------------------------------------------------------------
# Fused kernel: all layer weights resident in VMEM, in-kernel layer loop.
# ----------------------------------------------------------------------------
def en_mlp_fused_kernel(
    x_ref,       # (TB, S_pad)        bf16
    w_in_ref,    # (S_pad, H_pad)     bf16   fc_in.weight.T (padded)
    b_in_ref,    # (1, H_pad)         f32
    w_out_ref,   # (H_pad, A_pad)     bf16   fc_out.weight.T (padded)
    b_out_ref,   # (1, A_pad)         f32
    w_attn_ref,  # (L, H_pad, H_pad)  bf16   fused (Wv.T @ Wo.T) per layer
    w_mid_ref,   # (L, H_pad, H_pad)  bf16   fc_mid.weight.T per layer
    vec_ref,     # (L, 8, H_pad)      f32    rows: g1, be1, b_attn, g2, be2, bm
    o_ref,       # (TB, A_pad)        f32
    *,
    hidden_dim: int,
    num_layers: int,
):
    inv_h = 1.0 / float(hidden_dim)

    def layer_norm(v, g, b):
        # Padded feature lanes of v are exactly zero, so sums over all lanes
        # divided by the real hidden_dim give PyTorch's biased mean / E[x^2].
        # Padded output lanes are zeroed by the zero-padded gamma/beta.
        mean = jnp.sum(v, axis=-1, keepdims=True) * inv_h
        ex2 = jnp.sum(v * v, axis=-1, keepdims=True) * inv_h
        var = ex2 - mean * mean
        return (v - mean) * jax.lax.rsqrt(var + 1e-5) * g + b

    # h = relu(fc_in(x))
    h = (
        jnp.dot(x_ref[...], w_in_ref[...], preferred_element_type=jnp.float32)
        + b_in_ref[...]
    )
    h = jnp.maximum(h, 0.0)

    def layer_body(l, h):
        vecs = vec_ref[l]                       # (8, H_pad) f32
        g1, be1 = vecs[0:1, :], vecs[1:2, :]
        b_attn = vecs[2:3, :]
        g2, be2 = vecs[3:4, :], vecs[4:5, :]
        b_mid = vecs[5:6, :]

        # attention sub-block (softmax over a single key == 1 exactly;
        # Wv @ Wo and bv @ Wo + bo were pre-fused on the host)
        hn = layer_norm(h, g1, be1)
        attn = (
            jnp.dot(hn.astype(jnp.bfloat16), w_attn_ref[l],
                    preferred_element_type=jnp.float32)
            + b_attn
        )
        h = h + attn                            # residual (attn dropout = identity)

        # feed-forward sub-block
        hn2 = layer_norm(h, g2, be2)
        mid = jnp.maximum(
            jnp.dot(hn2.astype(jnp.bfloat16), w_mid_ref[l],
                    preferred_element_type=jnp.float32)
            + b_mid,
            0.0,
        )
        return h + mid                          # residual (dropout = identity)

    if num_layers <= 8:
        # Fully static indexing / unrolled — best for the common small-L case.
        for l in range(num_layers):
            h = layer_body(l, h)
    else:
        h = jax.lax.fori_loop(0, num_layers, layer_body, h)

    # logits = fc_out(h)
    o_ref[...] = (
        jnp.dot(h.astype(jnp.bfloat16), w_out_ref[...],
                preferred_element_type=jnp.float32)
        + b_out_ref[...]
    )


# ----------------------------------------------------------------------------
# Streaming kernel (fallback when layer weights do not fit VMEM):
# grid = (batch_tiles, num_layers); one layer's weights DMA'd per step.
# ----------------------------------------------------------------------------
def en_mlp_stream_kernel(
    x_ref,       # (TB, S_pad)      bf16
    w_in_ref,    # (S_pad, H_pad)   bf16
    b_in_ref,    # (1, H_pad)       f32
    w_out_ref,   # (H_pad, A_pad)   bf16
    b_out_ref,   # (1, A_pad)       f32
    w_attn_ref,  # (H_pad, H_pad)   bf16   layer l (leading dim squeezed)
    w_mid_ref,   # (H_pad, H_pad)   bf16   layer l
    vec_ref,     # (8, H_pad)       f32    layer l
    o_ref,       # (TB, A_pad)      f32
    h_ref,       # scratch (TB, H_pad) f32  running activation (carried over l)
    *,
    hidden_dim: int,
):
    l = pl.program_id(1)
    last = pl.num_programs(1) - 1

    @pl.when(l == 0)
    def _():
        h0 = (
            jnp.dot(x_ref[...], w_in_ref[...], preferred_element_type=jnp.float32)
            + b_in_ref[...]
        )
        h_ref[...] = jnp.maximum(h0, 0.0)

    vecs = vec_ref[...]
    g1, be1 = vecs[0:1, :], vecs[1:2, :]
    b_attn = vecs[2:3, :]
    g2, be2 = vecs[3:4, :], vecs[4:5, :]
    b_mid = vecs[5:6, :]

    inv_h = 1.0 / float(hidden_dim)

    def layer_norm(v, g, b):
        mean = jnp.sum(v, axis=-1, keepdims=True) * inv_h
        var = jnp.sum(v * v, axis=-1, keepdims=True) * inv_h - mean * mean
        return (v - mean) * jax.lax.rsqrt(var + 1e-5) * g + b

    h = h_ref[...]

    hn = layer_norm(h, g1, be1)
    attn = (
        jnp.dot(hn.astype(jnp.bfloat16), w_attn_ref[...],
                preferred_element_type=jnp.float32)
        + b_attn
    )
    h = h + attn

    hn2 = layer_norm(h, g2, be2)
    mid = jnp.maximum(
        jnp.dot(hn2.astype(jnp.bfloat16), w_mid_ref[...],
                preferred_element_type=jnp.float32)
        + b_mid,
        0.0,
    )
    h = h + mid
    h_ref[...] = h

    @pl.when(l == last)
    def _():
        o_ref[...] = (
            jnp.dot(h.astype(jnp.bfloat16), w_out_ref[...],
                    preferred_element_type=jnp.float32)
            + b_out_ref[...]
        )


# ----------------------------------------------------------------------------
# Parameter construction (deterministic, synthetic, PyTorch-like layouts)
# ----------------------------------------------------------------------------
def init_params(key, state_dim, hidden_dim, action_dim, num_layers):
    ks = jax.random.split(key, 8)
    scale = 0.1

    def mat(k, shape):
        return (scale * jax.random.normal(k, shape)).astype(jnp.float32)

    H, S, A, L = hidden_dim, state_dim, action_dim, num_layers
    return dict(
        w_in_t=mat(ks[0], (S, H)),                 # fc_in.weight.T
        b_in=mat(ks[1], (1, H)),
        g1=jnp.ones((L, H), jnp.float32),          # LayerNorm gamma=1
        be1=jnp.zeros((L, H), jnp.float32),        # beta=0
        wv_t=mat(ks[2], (L, H, H)),                # attn V-proj (W_v.T per layer)
        bv=mat(ks[3], (L, H)),
        wo_t=mat(ks[4], (L, H, H)),                # attn out_proj (W_o.T per layer)
        bo=jnp.zeros((L, H), jnp.float32),         # out_proj bias init = 0
        g2=jnp.ones((L, H), jnp.float32),
        be2=jnp.zeros((L, H), jnp.float32),
        wm_t=mat(ks[5], (L, H, H)),                # fc_mid.weight.T per layer
        bm=mat(ks[6], (L, H)),
        w_out_t=mat(ks[7], (H, A)),                # fc_out.weight.T
        b_out=jnp.zeros((1, A), jnp.float32),
    )


# ----------------------------------------------------------------------------
# Host-side packing: fuse attention matmuls, pad to lane-dense shapes, cast bf16.
# ----------------------------------------------------------------------------
def pack_params(params):
    S, H = params["w_in_t"].shape
    A = params["w_out_t"].shape[1]
    L = params["g1"].shape[0]
    S_pad = _round_up(S, 128)
    H_pad = _round_up(H, 128)
    A_pad = _round_up(A, 128)

    # Exact fusion of the seq_len==1 attention: (x@Wv + bv)@Wo + bo
    w_attn = jnp.einsum("lij,ljk->lik", params["wv_t"], params["wo_t"])
    b_attn = jnp.einsum("lj,ljk->lk", params["bv"], params["wo_t"]) + params["bo"]

    def pad2(a, r, c):
        return jnp.pad(a, ((0, r - a.shape[0]), (0, c - a.shape[1])))

    def pad3(a, r, c):
        return jnp.pad(a, ((0, 0), (0, r - a.shape[1]), (0, c - a.shape[2])))

    def padv(a, c):
        return jnp.pad(a, ((0, 0), (0, c - a.shape[1])))

    vecs = jnp.stack(
        [
            padv(params["g1"], H_pad),
            padv(params["be1"], H_pad),
            padv(b_attn, H_pad),
            padv(params["g2"], H_pad),
            padv(params["be2"], H_pad),
            padv(params["bm"], H_pad),
            jnp.zeros((L, H_pad), jnp.float32),
            jnp.zeros((L, H_pad), jnp.float32),
        ],
        axis=1,
    ).astype(jnp.float32)                              # (L, 8, H_pad)

    # TODO(synk): on v7x, optionally quantize w_attn/w_mid to fp8 (per-matrix
    # scales folded into the f32 accumulate path) to halve weight traffic.
    packed = dict(
        w_in=pad2(params["w_in_t"], S_pad, H_pad).astype(jnp.bfloat16),
        b_in=pad2(params["b_in"], 1, H_pad).astype(jnp.float32),
        w_out=pad2(params["w_out_t"], H_pad, A_pad).astype(jnp.bfloat16),
        b_out=pad2(params["b_out"], 1, A_pad).astype(jnp.float32),
        w_attn=pad3(w_attn, H_pad, H_pad).astype(jnp.bfloat16),
        w_mid=pad3(params["wm_t"], H_pad, H_pad).astype(jnp.bfloat16),
        vecs=vecs,
    )
    dims = dict(state_dim=S, hidden_dim=H, action_dim=A, num_layers=L,
                s_pad=S_pad, h_pad=H_pad, a_pad=A_pad)
    return packed, dims


# ----------------------------------------------------------------------------
# Wrapper
# ----------------------------------------------------------------------------
@functools.partial(jax.jit, static_argnames=("hidden_dim",))
def _forward_impl(x, packed, *, hidden_dim):
    B, S = x.shape
    S_pad, H_pad = packed["w_in"].shape
    A_pad = packed["w_out"].shape[1]
    L = packed["w_attn"].shape[0]

    # Generation-aware VMEM budget (v7x: 64 MiB, v5e/v6e: 128 MiB physical).
    vmem_phys = _vmem_capacity_bytes()
    vmem_limit = min(int(vmem_phys * 0.85), vmem_phys - (8 << 20))
    budget = int(vmem_limit * 0.75)  # headroom for compiler scratch / spills

    layer_w_bytes = L * (2 * H_pad * H_pad * 2 + 8 * H_pad * 4)
    fixed_w_bytes = (S_pad * H_pad + H_pad * A_pad) * 2 + (H_pad + A_pad) * 4
    per_layer_bytes = 2 * H_pad * H_pad * 2 + 8 * H_pad * 4

    # Batch tile: as large as VMEM affords (larger TILE_B => more FLOP/byte on
    # the weights), but split into >= 2 tiles when the batch is big enough so
    # the "parallel" axis shards across both v7x TensorCores.
    n_target_tiles = 2 if B > 8 else 1
    TILE_B = min(_round_up(-(-B // n_target_tiles), 8), 512)

    def act_bytes(tb):
        # x tile (bf16) + out tile (f32), double-buffered, plus f32 activations.
        return 2 * (tb * S_pad * 2 + tb * A_pad * 4) + 4 * tb * H_pad * 4

    def fused_fits(tb):
        # x2: BlockSpec inputs are double-buffered by default.
        # TODO(synk): pipeline_mode=pl.Buffered(1) on grid-invariant weights
        # would drop this to 1x and free headroom for a larger TILE_B.
        return 2 * (layer_w_bytes + fixed_w_bytes) + act_bytes(tb) <= budget

    def stream_fits(tb):
        return (2 * (per_layer_bytes + fixed_w_bytes) + act_bytes(tb)
                + tb * H_pad * 4) <= budget

    use_fused = fused_fits(8)
    fits = fused_fits if use_fused else stream_fits
    while TILE_B > 8 and not fits(TILE_B):
        TILE_B = max(8, _round_up(TILE_B // 2, 8))

    B_pad = _round_up(B, TILE_B)
    x_pad = jnp.pad(x.astype(jnp.float32),
                    ((0, B_pad - B), (0, S_pad - S))).astype(jnp.bfloat16)

    args = (x_pad,
            packed["w_in"], packed["b_in"],
            packed["w_out"], packed["b_out"],
            packed["w_attn"], packed["w_mid"],
            packed["vecs"])

    if use_fused:
        # Layer-resident path: single grid axis over batch tiles; layer loop
        # runs inside the kernel with all weights resident in VMEM.
        kernel = functools.partial(en_mlp_fused_kernel,
                                   hidden_dim=hidden_dim, num_layers=L)
        out = pl.pallas_call(
            kernel,
            out_shape=jax.ShapeDtypeStruct((B_pad, A_pad), jnp.float32),
            grid_spec=pltpu.PrefetchScalarGridSpec(
                num_scalar_prefetch=0,
                grid=(B_pad // TILE_B,),
                in_specs=[
                    pl.BlockSpec((TILE_B, S_pad), lambda b: (b, 0)),          # x
                    pl.BlockSpec((S_pad, H_pad), lambda b: (0, 0)),           # w_in
                    pl.BlockSpec((1, H_pad), lambda b: (0, 0)),               # b_in
                    pl.BlockSpec((H_pad, A_pad), lambda b: (0, 0)),           # w_out
                    pl.BlockSpec((1, A_pad), lambda b: (0, 0)),               # b_out
                    pl.BlockSpec((L, H_pad, H_pad), lambda b: (0, 0, 0)),     # w_attn
                    pl.BlockSpec((L, H_pad, H_pad), lambda b: (0, 0, 0)),     # w_mid
                    pl.BlockSpec((L, 8, H_pad), lambda b: (0, 0, 0)),         # vecs
                ],
                out_specs=pl.BlockSpec((TILE_B, A_pad), lambda b: (b, 0)),
            ),
            compiler_params=pltpu.CompilerParams(
                dimension_semantics=("parallel",),
                vmem_limit_bytes=vmem_limit,
            ),
        )(*args)
    else:
        # Streaming path: one layer's weights per grid step, activation carried
        # in a VMEM scratch accumulator across the (arbitrary) layer axis.
        kernel = functools.partial(en_mlp_stream_kernel, hidden_dim=hidden_dim)
        out = pl.pallas_call(
            kernel,
            out_shape=jax.ShapeDtypeStruct((B_pad, A_pad), jnp.float32),
            grid_spec=pltpu.PrefetchScalarGridSpec(
                num_scalar_prefetch=0,
                grid=(B_pad // TILE_B, L),
                in_specs=[
                    pl.BlockSpec((TILE_B, S_pad), lambda b, l: (b, 0)),        # x
                    pl.BlockSpec((S_pad, H_pad), lambda b, l: (0, 0)),         # w_in
                    pl.BlockSpec((1, H_pad), lambda b, l: (0, 0)),             # b_in
                    pl.BlockSpec((H_pad, A_pad), lambda b, l: (0, 0)),         # w_out
                    pl.BlockSpec((1, A_pad), lambda b, l: (0, 0)),             # b_out
                    pl.BlockSpec((None, H_pad, H_pad), lambda b, l: (l, 0, 0)),  # w_attn
                    pl.BlockSpec((None, H_pad, H_pad), lambda b, l: (l, 0, 0)),  # w_mid
                    pl.BlockSpec((None, 8, H_pad), lambda b, l: (l, 0, 0)),      # vecs
                ],
                out_specs=pl.BlockSpec((TILE_B, A_pad), lambda b, l: (b, 0)),
                scratch_shapes=[pltpu.VMEM((TILE_B, H_pad), jnp.float32)],
            ),
            compiler_params=pltpu.CompilerParams(
                dimension_semantics=("parallel", "arbitrary"),
                vmem_limit_bytes=vmem_limit,
            ),
        )(*args)

    return out[:B]


def en_mlp_forward(x, packed, dims):
    squeeze_output = x.ndim == 1
    if squeeze_output:
        x = x[None, :]
    logits = _forward_impl(x, packed, hidden_dim=dims["hidden_dim"])
    logits = logits[:, : dims["action_dim"]]
    return logits[0] if squeeze_output else logits


# ----------------------------------------------------------------------------
# Pure-JAX reference (f32, unfused) — matches the PyTorch module in eval mode.
# ----------------------------------------------------------------------------
def en_mlp_reference(x, params):
    squeeze_output = x.ndim == 1
    if squeeze_output:
        x = x[None, :]

    def ln(v, g, b, eps=1e-5):
        m = jnp.mean(v, axis=-1, keepdims=True)
        var = jnp.mean(jnp.square(v - m), axis=-1, keepdims=True)
        return (v - m) / jnp.sqrt(var + eps) * g + b

    h = jnp.maximum(x @ params["w_in_t"] + params["b_in"], 0.0)
    L = params["g1"].shape[0]
    for l in range(L):
        hn = ln(h, params["g1"][l], params["be1"][l])
        v = hn @ params["wv_t"][l] + params["bv"][l]
        attn = v @ params["wo_t"][l] + params["bo"][l]
        h = h + attn
        hn2 = ln(h, params["g2"][l], params["be2"][l])
        hm = jnp.maximum(hn2 @ params["wm_t"][l] + params["bm"][l], 0.0)
        h = h + hm
    logits = h @ params["w_out_t"] + params["b_out"]
    return logits[0] if squeeze_output else logits


# ----------------------------------------------------------------------------
if __name__ == "__main__":
    STATE_DIM, HIDDEN_DIM, ACTION_DIM = 16, 32, 8
    N_HEADS, NUM_LAYERS = 4, 2
    BATCH = 2

    key = jax.random.PRNGKey(0)
    k_params, k_x = jax.random.split(key)
    params = init_params(k_params, STATE_DIM, HIDDEN_DIM, ACTION_DIM, NUM_LAYERS)
    packed, dims = pack_params(params)
    x = jax.random.normal(k_x, (BATCH, STATE_DIM), dtype=jnp.float32)

    logits = en_mlp_forward(x, packed, dims)
    logits = jax.block_until_ready(logits)

    ref = en_mlp_reference(x, params)
    assert logits.shape == (BATCH, ACTION_DIM)
    # bf16 matmuls (f32 accumulation) vs the f32 reference.
    assert jnp.allclose(logits, ref, rtol=3e-2, atol=3e-2), "mismatch vs reference"

    print("KERNEL_OK")
</pallas_src>

<mosaic_0001>
module attributes {stable_mosaic.version = 11 : i64} {
  func.func @en_mlp_fused_kernel(%arg0: i32, %arg1: memref<8x128xbf16, #tpu.memory_space<vmem>>, %arg2: memref<128x128xbf16, #tpu.memory_space<vmem>>, %arg3: memref<1x128xf32, #tpu.memory_space<vmem>>, %arg4: memref<128x128xbf16, #tpu.memory_space<vmem>>, %arg5: memref<1x128xf32, #tpu.memory_space<vmem>>, %arg6: memref<2x128x128xbf16, #tpu.memory_space<vmem>>, %arg7: memref<2x128x128xbf16, #tpu.memory_space<vmem>>, %arg8: memref<2x8x128xf32, #tpu.memory_space<vmem>>, %arg9: memref<8x128xf32, #tpu.memory_space<vmem>>) attributes {dimension_semantics = [#tpu.dimension_semantics<parallel>], iteration_bounds = array<i64: 1>, scalar_prefetch = 0 : i64, scratch_operands = 0 : i64, tpu.core_type = #tpu.core_type<tc>, window_params = [{transform_indices = @transform_0, window_bounds = array<i64: 8, 128>}, {pipeline_mode = #tpu.pipeline_mode<synchronous>, transform_indices = @transform_1, window_bounds = array<i64: 128, 128>}, {pipeline_mode = #tpu.pipeline_mode<synchronous>, transform_indices = @transform_2, window_bounds = array<i64: 1, 128>}, {pipeline_mode = #tpu.pipeline_mode<synchronous>, transform_indices = @transform_3, window_bounds = array<i64: 128, 128>}, {pipeline_mode = #tpu.pipeline_mode<synchronous>, transform_indices = @transform_4, window_bounds = array<i64: 1, 128>}, {pipeline_mode = #tpu.pipeline_mode<synchronous>, transform_indices = @transform_5, window_bounds = array<i64: 2, 128, 128>}, {pipeline_mode = #tpu.pipeline_mode<synchronous>, transform_indices = @transform_6, window_bounds = array<i64: 2, 128, 128>}, {pipeline_mode = #tpu.pipeline_mode<synchronous>, transform_indices = @transform_7, window_bounds = array<i64: 2, 8, 128>}, {transform_indices = @transform_8, window_bounds = array<i64: 8, 128>}]} {
    %c0 = arith.constant 0 : index
    %c0_0 = arith.constant 0 : index
    %0 = vector.load %arg1[%c0, %c0_0] : memref<8x128xbf16, #tpu.memory_space<vmem>>, vector<8x128xbf16>
    %c0_1 = arith.constant 0 : index
    %c0_2 = arith.constant 0 : index
    %1 = vector.load %arg2[%c0_1, %c0_2] : memref<128x128xbf16, #tpu.memory_space<vmem>>, vector<128x128xbf16>
    %cst = arith.constant dense<0.000000e+00> : vector<8x128xf32>
    %2 = tpu.matmul %0, %1, %cst {dimension_numbers = #tpu.dot_dimension_numbers<[1], [0], [0], [1], [0, 0, 1, 1], [], []>} : vector<8x128xbf16>, vector<128x128xbf16>, vector<8x128xf32> -> vector<8x128xf32>
    %c0_3 = arith.constant 0 : index
    %c0_4 = arith.constant 0 : index
    %3 = vector.load %arg3[%c0_3, %c0_4] : memref<1x128xf32, #tpu.memory_space<vmem>>, vector<1x128xf32>
    %4 = vector.broadcast %3 : vector<1x128xf32> to vector<8x128xf32>
    %5 = arith.addf %2, %4 : vector<8x128xf32>
    %cst_5 = arith.constant 0.000000e+00 : f32
    %6 = vector.broadcast %cst_5 : f32 to vector<8x128xf32>
    %7 = arith.maximumf %5, %6 : vector<8x128xf32>
    %c0_6 = arith.constant 0 : index
    %c0_7 = arith.constant 0 : index
    %c0_8 = arith.constant 0 : index
    %8 = vector.load %arg8[%c0_6, %c0_7, %c0_8] : memref<2x8x128xf32, #tpu.memory_space<vmem>>, vector<1x8x128xf32>
    %9 = vector.shape_cast %8 : vector<1x8x128xf32> to vector<8x128xf32>
    %10 = vector.extract_strided_slice %9 {offsets = [0, 0], sizes = [1, 128], strides = [1, 1]} : vector<8x128xf32> to vector<1x128xf32>
    %11 = vector.extract_strided_slice %9 {offsets = [1, 0], sizes = [1, 128], strides = [1, 1]} : vector<8x128xf32> to vector<1x128xf32>
    %12 = vector.extract_strided_slice %9 {offsets = [2, 0], sizes = [1, 128], strides = [1, 1]} : vector<8x128xf32> to vector<1x128xf32>
    %13 = vector.extract_strided_slice %9 {offsets = [3, 0], sizes = [1, 128], strides = [1, 1]} : vector<8x128xf32> to vector<1x128xf32>
    %14 = vector.extract_strided_slice %9 {offsets = [4, 0], sizes = [1, 128], strides = [1, 1]} : vector<8x128xf32> to vector<1x128xf32>
    %15 = vector.extract_strided_slice %9 {offsets = [5, 0], sizes = [1, 128], strides = [1, 1]} : vector<8x128xf32> to vector<1x128xf32>
    %cst_9 = arith.constant dense<0.000000e+00> : vector<8xf32>
    %16 = vector.multi_reduction <add>, %7, %cst_9 [1] : vector<8x128xf32> to vector<8xf32>
    %17 = vector.shape_cast %16 : vector<8xf32> to vector<8x1xf32>
    %cst_10 = arith.constant 3.125000e-02 : f32
    %18 = vector.broadcast %cst_10 : f32 to vector<8x1xf32>
    %19 = arith.mulf %17, %18 : vector<8x1xf32>
    %20 = arith.mulf %7, %7 : vector<8x128xf32>
    %cst_11 = arith.constant dense<0.000000e+00> : vector<8xf32>
    %21 = vector.multi_reduction <add>, %20, %cst_11 [1] : vector<8x128xf32> to vector<8xf32>
    %22 = vector.shape_cast %21 : vector<8xf32> to vector<8x1xf32>
    %cst_12 = arith.constant 3.125000e-02 : f32
    %23 = vector.broadcast %cst_12 : f32 to vector<8x1xf32>
    %24 = arith.mulf %22, %23 : vector<8x1xf32>
    %25 = arith.mulf %19, %19 : vector<8x1xf32>
    %26 = arith.subf %24, %25 : vector<8x1xf32>
    %27 = vector.broadcast %19 : vector<8x1xf32> to vector<8x128xf32>
    %28 = arith.subf %7, %27 : vector<8x128xf32>
    %cst_13 = arith.constant 9.99999974E-6 : f32
    %29 = vector.broadcast %cst_13 : f32 to vector<8x1xf32>
    %30 = arith.addf %26, %29 : vector<8x1xf32>
    %31 = math.rsqrt %30 : vector<8x1xf32>
    %32 = vector.broadcast %31 : vector<8x1xf32> to vector<8x128xf32>
    %33 = arith.mulf %28, %32 : vector<8x128xf32>
    %34 = vector.broadcast %10 : vector<1x128xf32> to vector<8x128xf32>
    %35 = arith.mulf %33, %34 : vector<8x128xf32>
    %36 = vector.broadcast %11 : vector<1x128xf32> to vector<8x128xf32>
    %37 = arith.addf %35, %36 : vector<8x128xf32>
    %38 = arith.truncf %37 : vector<8x128xf32> to vector<8x128xbf16>
    %c0_14 = arith.constant 0 : index
    %c0_15 = arith.constant 0 : index
    %c0_16 = arith.constant 0 : index
    %39 = vector.load %arg6[%c0_14, %c0_15, %c0_16] : memref<2x128x128xbf16, #tpu.memory_space<vmem>>, vector<1x128x128xbf16>
    %40 = vector.shape_cast %39 : vector<1x128x128xbf16> to vector<128x128xbf16>
    %cst_17 = arith.constant dense<0.000000e+00> : vector<8x128xf32>
    %41 = tpu.matmul %38, %40, %cst_17 {dimension_numbers = #tpu.dot_dimension_numbers<[1], [0], [0], [1], [0, 0, 1, 1], [], []>} : vector<8x128xbf16>, vector<128x128xbf16>, vector<8x128xf32> -> vector<8x128xf32>
    %42 = vector.broadcast %12 : vector<1x128xf32> to vector<8x128xf32>
    %43 = arith.addf %41, %42 : vector<8x128xf32>
    %44 = arith.addf %7, %43 : vector<8x128xf32>
    %cst_18 = arith.constant dense<0.000000e+00> : vector<8xf32>
    %45 = vector.multi_reduction <add>, %44, %cst_18 [1] : vector<8x128xf32> to vector<8xf32>
    %46 = vector.shape_cast %45 : vector<8xf32> to vector<8x1xf32>
    %cst_19 = arith.constant 3.125000e-02 : f32
    %47 = vector.broadcast %cst_19 : f32 to vector<8x1xf32>
    %48 = arith.mulf %46, %47 : vector<8x1xf32>
    %49 = arith.mulf %44, %44 : vector<8x128xf32>
    %cst_20 = arith.constant dense<0.000000e+00> : vector<8xf32>
    %50 = vector.multi_reduction <add>, %49, %cst_20 [1] : vector<8x128xf32> to vector<8xf32>
    %51 = vector.shape_cast %50 : vector<8xf32> to vector<8x1xf32>
    %cst_21 = arith.constant 3.125000e-02 : f32
    %52 = vector.broadcast %cst_21 : f32 to vector<8x1xf32>
    %53 = arith.mulf %51, %52 : vector<8x1xf32>
    %54 = arith.mulf %48, %48 : vector<8x1xf32>
    %55 = arith.subf %53, %54 : vector<8x1xf32>
    %56 = vector.broadcast %48 : vector<8x1xf32> to vector<8x128xf32>
    %57 = arith.subf %44, %56 : vector<8x128xf32>
    %cst_22 = arith.constant 9.99999974E-6 : f32
    %58 = vector.broadcast %cst_22 : f32 to vector<8x1xf32>
    %59 = arith.addf %55, %58 : vector<8x1xf32>
    %60 = math.rsqrt %59 : vector<8x1xf32>
    %61 = vector.broadcast %60 : vector<8x1xf32> to vector<8x128xf32>
    %62 = arith.mulf %57, %61 : vector<8x128xf32>
    %63 = vector.broadcast %13 : vector<1x128xf32> to vector<8x128xf32>
    %64 = arith.mulf %62, %63 : vector<8x128xf32>
    %65 = vector.broadcast %14 : vector<1x128xf32> to vector<8x128xf32>
    %66 = arith.addf %64, %65 : vector<8x128xf32>
    %67 = arith.truncf %66 : vector<8x128xf32> to vector<8x128xbf16>
    %c0_23 = arith.constant 0 : index
    %c0_24 = arith.constant 0 : index
    %c0_25 = arith.constant 0 : index
    %68 = vector.load %arg7[%c0_23, %c0_24, %c0_25] : memref<2x128x128xbf16, #tpu.memory_space<vmem>>, vector<1x128x128xbf16>
    %69 = vector.shape_cast %68 : vector<1x128x128xbf16> to vector<128x128xbf16>
    %cst_26 = arith.constant dense<0.000000e+00> : vector<8x128xf32>
    %70 = tpu.matmul %67, %69, %cst_26 {dimension_numbers = #tpu.dot_dimension_numbers<[1], [0], [0], [1], [0, 0, 1, 1], [], []>} : vector<8x128xbf16>, vector<128x128xbf16>, vector<8x128xf32> -> vector<8x128xf32>
    %71 = vector.broadcast %15 : vector<1x128xf32> to vector<8x128xf32>
    %72 = arith.addf %70, %71 : vector<8x128xf32>
    %cst_27 = arith.constant 0.000000e+00 : f32
    %73 = vector.broadcast %cst_27 : f32 to vector<8x128xf32>
    %74 = arith.maximumf %72, %73 : vector<8x128xf32>
    %75 = arith.addf %44, %74 : vector<8x128xf32>
    %c1 = arith.constant 1 : index
    %c0_28 = arith.constant 0 : index
    %c0_29 = arith.constant 0 : index
    %76 = vector.load %arg8[%c1, %c0_28, %c0_29] : memref<2x8x128xf32, #tpu.memory_space<vmem>>, vector<1x8x128xf32>
    %77 = vector.shape_cast %76 : vector<1x8x128xf32> to vector<8x128xf32>
    %78 = vector.extract_strided_slice %77 {offsets = [0, 0], sizes = [1, 128], strides = [1, 1]} : vector<8x128xf32> to vector<1x128xf32>
    %79 = vector.extract_strided_slice %77 {offsets = [1, 0], sizes = [1, 128], strides = [1, 1]} : vector<8x128xf32> to vector<1x128xf32>
    %80 = vector.extract_strided_slice %77 {offsets = [2, 0], sizes = [1, 128], strides = [1, 1]} : vector<8x128xf32> to vector<1x128xf32>
    %81 = vector.extract_strided_slice %77 {offsets = [3, 0], sizes = [1, 128], strides = [1, 1]} : vector<8x128xf32> to vector<1x128xf32>
    %82 = vector.extract_strided_slice %77 {offsets = [4, 0], sizes = [1, 128], strides = [1, 1]} : vector<8x128xf32> to vector<1x128xf32>
    %83 = vector.extract_strided_slice %77 {offsets = [5, 0], sizes = [1, 128], strides = [1, 1]} : vector<8x128xf32> to vector<1x128xf32>
    %cst_30 = arith.constant dense<0.000000e+00> : vector<8xf32>
    %84 = vector.multi_reduction <add>, %75, %cst_30 [1] : vector<8x128xf32> to vector<8xf32>
    %85 = vector.shape_cast %84 : vector<8xf32> to vector<8x1xf32>
    %cst_31 = arith.constant 3.125000e-02 : f32
    %86 = vector.broadcast %cst_31 : f32 to vector<8x1xf32>
    %87 = arith.mulf %85, %86 : vector<8x1xf32>
    %88 = arith.mulf %75, %75 : vector<8x128xf32>
    %cst_32 = arith.constant dense<0.000000e+00> : vector<8xf32>
    %89 = vector.multi_reduction <add>, %88, %cst_32 [1] : vector<8x128xf32> to vector<8xf32>
    %90 = vector.shape_cast %89 : vector<8xf32> to vector<8x1xf32>
    %cst_33 = arith.constant 3.125000e-02 : f32
    %91 = vector.broadcast %cst_33 : f32 to vector<8x1xf32>
    %92 = arith.mulf %90, %91 : vector<8x1xf32>
    %93 = arith.mulf %87, %87 : vector<8x1xf32>
    %94 = arith.subf %92, %93 : vector<8x1xf32>
    %95 = vector.broadcast %87 : vector<8x1xf32> to vector<8x128xf32>
    %96 = arith.subf %75, %95 : vector<8x128xf32>
    %cst_34 = arith.constant 9.99999974E-6 : f32
    %97 = vector.broadcast %cst_34 : f32 to vector<8x1xf32>
    %98 = arith.addf %94, %97 : vector<8x1xf32>
    %99 = math.rsqrt %98 : vector<8x1xf32>
    %100 = vector.broadcast %99 : vector<8x1xf32> to vector<8x128xf32>
    %101 = arith.mulf %96, %100 : vector<8x128xf32>
    %102 = vector.broadcast %78 : vector<1x128xf32> to vector<8x128xf32>
    %103 = arith.mulf %101, %102 : vector<8x128xf32>
    %104 = vector.broadcast %79 : vector<1x128xf32> to vector<8x128xf32>
    %105 = arith.addf %103, %104 : vector<8x128xf32>
    %106 = arith.truncf %105 : vector<8x128xf32> to vector<8x128xbf16>
    %c1_35 = arith.constant 1 : index
    %c0_36 = arith.constant 0 : index
    %c0_37 = arith.constant 0 : index
    %107 = vector.load %arg6[%c1_35, %c0_36, %c0_37] : memref<2x128x128xbf16, #tpu.memory_space<vmem>>, vector<1x128x128xbf16>
    %108 = vector.shape_cast %107 : vector<1x128x128xbf16> to vector<128x128xbf16>
    %cst_38 = arith.constant dense<0.000000e+00> : vector<8x128xf32>
    %109 = tpu.matmul %106, %108, %cst_38 {dimension_numbers = #tpu.dot_dimension_numbers<[1], [0], [0], [1], [0, 0, 1, 1], [], []>} : vector<8x128xbf16>, vector<128x128xbf16>, vector<8x128xf32> -> vector<8x128xf32>
    %110 = vector.broadcast %80 : vector<1x128xf32> to vector<8x128xf32>
    %111 = arith.addf %109, %110 : vector<8x128xf32>
    %112 = arith.addf %75, %111 : vector<8x128xf32>
    %cst_39 = arith.constant dense<0.000000e+00> : vector<8xf32>
    %113 = vector.multi_reduction <add>, %112, %cst_39 [1] : vector<8x128xf32> to vector<8xf32>
    %114 = vector.shape_cast %113 : vector<8xf32> to vector<8x1xf32>
    %cst_40 = arith.constant 3.125000e-02 : f32
    %115 = vector.broadcast %cst_40 : f32 to vector<8x1xf32>
    %116 = arith.mulf %114, %115 : vector<8x1xf32>
    %117 = arith.mulf %112, %112 : vector<8x128xf32>
    %cst_41 = arith.constant dense<0.000000e+00> : vector<8xf32>
    %118 = vector.multi_reduction <add>, %117, %cst_41 [1] : vector<8x128xf32> to vector<8xf32>
    %119 = vector.shape_cast %118 : vector<8xf32> to vector<8x1xf32>
    %cst_42 = arith.constant 3.125000e-02 : f32
    %120 = vector.broadcast %cst_42 : f32 to vector<8x1xf32>
    %121 = arith.mulf %119, %120 : vector<8x1xf32>
    %122 = arith.mulf %116, %116 : vector<8x1xf32>
    %123 = arith.subf %121, %122 : vector<8x1xf32>
    %124 = vector.broadcast %116 : vector<8x1xf32> to vector<8x128xf32>
    %125 = arith.subf %112, %124 : vector<8x128xf32>
    %cst_43 = arith.constant 9.99999974E-6 : f32
    %126 = vector.broadcast %cst_43 : f32 to vector<8x1xf32>
    %127 = arith.addf %123, %126 : vector<8x1xf32>
    %128 = math.rsqrt %127 : vector<8x1xf32>
    %129 = vector.broadcast %128 : vector<8x1xf32> to vector<8x128xf32>
    %130 = arith.mulf %125, %129 : vector<8x128xf32>
    %131 = vector.broadcast %81 : vector<1x128xf32> to vector<8x128xf32>
    %132 = arith.mulf %130, %131 : vector<8x128xf32>
    %133 = vector.broadcast %82 : vector<1x128xf32> to vector<8x128xf32>
    %134 = arith.addf %132, %133 : vector<8x128xf32>
    %135 = arith.truncf %134 : vector<8x128xf32> to vector<8x128xbf16>
    %c1_44 = arith.constant 1 : index
    %c0_45 = arith.constant 0 : index
    %c0_46 = arith.constant 0 : index
    %136 = vector.load %arg7[%c1_44, %c0_45, %c0_46] : memref<2x128x128xbf16, #tpu.memory_space<vmem>>, vector<1x128x128xbf16>
    %137 = vector.shape_cast %136 : vector<1x128x128xbf16> to vector<128x128xbf16>
    %cst_47 = arith.constant dense<0.000000e+00> : vector<8x128xf32>
    %138 = tpu.matmul %135, %137, %cst_47 {dimension_numbers = #tpu.dot_dimension_numbers<[1], [0], [0], [1], [0, 0, 1, 1], [], []>} : vector<8x128xbf16>, vector<128x128xbf16>, vector<8x128xf32> -> vector<8x128xf32>
    %139 = vector.broadcast %83 : vector<1x128xf32> to vector<8x128xf32>
    %140 = arith.addf %138, %139 : vector<8x128xf32>
    %cst_48 = arith.constant 0.000000e+00 : f32
    %141 = vector.broadcast %cst_48 : f32 to vector<8x128xf32>
    %142 = arith.maximumf %140, %141 : vector<8x128xf32>
    %143 = arith.addf %112, %142 : vector<8x128xf32>
    %144 = arith.truncf %143 : vector<8x128xf32> to vector<8x128xbf16>
    %c0_49 = arith.constant 0 : index
    %c0_50 = arith.constant 0 : index
    %145 = vector.load %arg4[%c0_49, %c0_50] : memref<128x128xbf16, #tpu.memory_space<vmem>>, vector<128x128xbf16>
    %cst_51 = arith.constant dense<0.000000e+00> : vector<8x128xf32>
    %146 = tpu.matmul %144, %145, %cst_51 {dimension_numbers = #tpu.dot_dimension_numbers<[1], [0], [0], [1], [0, 0, 1, 1], [], []>} : vector<8x128xbf16>, vector<128x128xbf16>, vector<8x128xf32> -> vector<8x128xf32>
    %c0_52 = arith.constant 0 : index
    %c0_53 = arith.constant 0 : index
    %147 = vector.load %arg5[%c0_52, %c0_53] : memref<1x128xf32, #tpu.memory_space<vmem>>, vector<1x128xf32>
    %148 = vector.broadcast %147 : vector<1x128xf32> to vector<8x128xf32>
    %149 = arith.addf %146, %148 : vector<8x128xf32>
    %c0_54 = arith.constant 0 : index
    %c0_55 = arith.constant 0 : index
    %150 = vector.load %arg9[%c0_54, %c0_55] : memref<8x128xf32, #tpu.memory_space<vmem>>, vector<8x128xf32>
    tpu.vector_store %arg9[%c0_54, %c0_55], %149 {strides = array<i32>} : memref<8x128xf32, #tpu.memory_space<vmem>>, vector<8x128xf32>,
    return
  }
  func.func @transform_0(%arg0: i32) -> (i32, i32) {
    %c0_i32 = arith.constant 0 : i32
    %c0_i32_0 = arith.constant 0 : i32
    return %arg0, %c0_i32 : i32, i32
  }
  func.func @transform_1(%arg0: i32) -> (i32, i32) {
    %c0_i32 = arith.constant 0 : i32
    %c0_i32_0 = arith.constant 0 : i32
    %c0_i32_1 = arith.constant 0 : i32
    return %c0_i32, %c0_i32_0 : i32, i32
  }
  func.func @transform_2(%arg0: i32) -> (i32, i32) {
    %c0_i32 = arith.constant 0 : i32
    %c0_i32_0 = arith.constant 0 : i32
    %c0_i32_1 = arith.constant 0 : i32
    return %c0_i32, %c0_i32_0 : i32, i32
  }
  func.func @transform_3(%arg0: i32) -> (i32, i32) {
    %c0_i32 = arith.constant 0 : i32
    %c0_i32_0 = arith.constant 0 : i32
    %c0_i32_1 = arith.constant 0 : i32
    return %c0_i32, %c0_i32_0 : i32, i32
  }
  func.func @transform_4(%arg0: i32) -> (i32, i32) {
    %c0_i32 = arith.constant 0 : i32
    %c0_i32_0 = arith.constant 0 : i32
    %c0_i32_1 = arith.constant 0 : i32
    return %c0_i32, %c0_i32_0 : i32, i32
  }
  func.func @transform_5(%arg0: i32) -> (i32, i32, i32) {
    %c0_i32 = arith.constant 0 : i32
    %c0_i32_0 = arith.constant 0 : i32
    %c0_i32_1 = arith.constant 0 : i32
    %c0_i32_2 = arith.constant 0 : i32
    return %c0_i32, %c0_i32_0, %c0_i32_1 : i32, i32, i32
  }
  func.func @transform_6(%arg0: i32) -> (i32, i32, i32) {
    %c0_i32 = arith.constant 0 : i32
    %c0_i32_0 = arith.constant 0 : i32
    %c0_i32_1 = arith.constant 0 : i32
    %c0_i32_2 = arith.constant 0 : i32
    return %c0_i32, %c0_i32_0, %c0_i32_1 : i32, i32, i32
  }
  func.func @transform_7(%arg0: i32) -> (i32, i32, i32) {
    %c0_i32 = arith.constant 0 : i32
    %c0_i32_0 = arith.constant 0 : i32
    %c0_i32_1 = arith.constant 0 : i32
    %c0_i32_2 = arith.constant 0 : i32
    return %c0_i32, %c0_i32_0, %c0_i32_1 : i32, i32, i32
  }
  func.func @transform_8(%arg0: i32) -> (i32, i32) {
    %c0_i32 = arith.constant 0 : i32
    %c0_i32_0 = arith.constant 0 : i32
    return %arg0, %c0_i32 : i32, i32
  }
}

</mosaic_0001>

<bundles_post_ra>
// kernel: _forward_impl.1
= control target key start
LH: loop header
LB: loop body
LE: loop exit
PB: predicated region body
PF: predicated region fallthrough
CT: control target
= control target key end

     0   :  { %13 = vsyncpa [#allocation3], 0  ;;  %s1477_s0 = inlined_call_operand.vmem [shape: bf16[8,128], index: 0, kind: input, shape index: {}]   ;;  %s1478_s1 = inlined_call_operand.hbm [shape: bf16[128,128], index: 1, kind: input, shape index: {}]   ;;  %s1479_s2 = inlined_call_operand.vmem [shape: f32[1,128], index: 2, kind: input, shape index: {}]   ;;  %s1480_s3 = inlined_call_operand.hbm [shape: bf16[128,128], index: 3, kind: input, shape index: {}]   ;;  %s1481_s4 = inlined_call_operand.vmem [shape: f32[1,128], index: 4, kind: input, shape index: {}]   ;;  %s1482_s5 = inlined_call_operand.hbm [shape: bf16[2,128,128], index: 5, kind: input, shape index: {}]   ;;  %s1483_s6 = inlined_call_operand.hbm [shape: bf16[2,128,128], index: 6, kind: input, shape index: {}]   ;;  %s1484_s7 = inlined_call_operand.hbm [shape: f32[2,8,128], index: 7, kind: input, shape index: {}]   ;;  %s1485_s8 = inlined_call_operand.vmem [shape: f32[8,128], index: 8, kind: output, shape index: {}]  }
   0x1   :  { %14 = vsyncpa [#allocation5], 0 }
   0x2   :  { %15 = vsyncpa [#allocation8], 0  ;;  %s1267_s27 = smov [#allocation4]   ;;  %s1268_s29 = smov [#allocation7]  }
   0x3   :  { %s37_s28 = sshll.u32 %s1267_s27, 4  ;;  %s63_s30 = sshll.u32 %s1268_s29, 4  ;;  %s38_s28 = int_to_ptr.vmem [resolvable:$true] %s37_s28  ;;  %s64_s30 = int_to_ptr.vmem [resolvable:$true] %s63_s30 }
   0x4   :  { %s1169_s9 = scalar_lea.vmem %s38_s28, 1024  ;;  %p1174_p1 = scmp.lt.s32.totalorder %s38_s28, %s38_s28 }
   0x5   :  { %p1170_p0 = scmp.ne.s32.totalorder %s38_s28, %s1169_s9  ;;  %p1175_p2 = scmp.lt.s32.totalorder %s1169_s9, %s1169_s9 }
   0x7   :  { %p1176_p3 = por %p1175_p2, %p1174_p1 }
   0x9   :  { %p1177_p4 = pnand %p1176_p3, %p1170_p0 }
   0xb   :  { %1180 = shalt.err (!%p1177_p4)
}
   0xc   :  { %s1269_s10 = smov 64   ;;  %s1270_s11 = smov 4  }
   0xd   :  { %43 = dma.hbm_to_vmem [thread:$0]  %s1480_s3, 1024, %s38_s28, [#allocation5], %s1269_s10, %s1269_s10, %s1270_s11  }
   0xe   :  { %s1189_s14 = scalar_lea.vmem %s64_s30, 2048  ;;  %p1194_p6 = scmp.lt.s32.totalorder %s64_s30, %s64_s30 }
   0xf   :  { %p1190_p5 = scmp.ne.s32.totalorder %s64_s30, %s1189_s14  ;;  %p1195_p7 = scmp.lt.s32.totalorder %s1189_s14, %s1189_s14 }
  0x11   :  { %p1196_p8 = por %p1195_p7, %p1194_p6 }
  0x13   :  { %p1197_p9 = pnand %p1196_p8, %p1190_p5 }
  0x15   :  { %1200 = shalt.err (!%p1197_p9)
}
  0x16   :  { %69 = dma.hbm_to_vmem [thread:$0]  %s1483_s6, 2048, %s64_s30, [#allocation8], %s1269_s10, %s1269_s10, %s1270_s11  }
  0x17   :  { %s1271_s17 = smov [#allocation2]   ;;  %s1272_s19 = smov [#allocation6]  }
  0x18   :  { %s23_s18 = sshll.u32 %s1271_s17, 4  ;;  %s51_s20 = sshll.u32 %s1272_s19, 4  ;;  %s24_s18 = int_to_ptr.vmem [resolvable:$true] %s23_s18  ;;  %s52_s20 = int_to_ptr.vmem [resolvable:$true] %s51_s20 }
  0x19   :  { %s1209_s3 = scalar_lea.vmem %s24_s18, 1024  ;;  %p1214_p11 = scmp.lt.s32.totalorder %s24_s18, %s24_s18 }
  0x1a   :  { %p1210_p10 = scmp.ne.s32.totalorder %s24_s18, %s1209_s3  ;;  %p1215_p12 = scmp.lt.s32.totalorder %s1209_s3, %s1209_s3 }
  0x1c   :  { %p1216_p13 = por %p1215_p12, %p1214_p11 }
  0x1e   :  { %p1217_p0 = pnand %p1216_p13, %p1210_p10 }
  0x20   :  { %1220 = shalt.err (!%p1217_p0)
}
  0x21   :  { %29 = dma.hbm_to_vmem [thread:$0]  %s1478_s1, 1024, %s24_s18, [#allocation3], %s1269_s10, %s1269_s10, %s1270_s11  }
  0x22   :  { %s1229_s6 = scalar_lea.vmem %s52_s20, 2048  ;;  %p1234_p2 = scmp.lt.s32.totalorder %s52_s20, %s52_s20 }
  0x23   :  { %p1230_p1 = scmp.ne.s32.totalorder %s52_s20, %s1229_s6  ;;  %p1235_p3 = scmp.lt.s32.totalorder %s1229_s6, %s1229_s6 }
  0x25   :  { %p1236_p4 = por %p1235_p3, %p1234_p2 }
  0x27   :  { %p1237_p5 = pnand %p1236_p4, %p1230_p1 }
  0x29   :  { %1240 = shalt.err (!%p1237_p5)
}
  0x2a   :  { %57 = dma.hbm_to_vmem [thread:$0]  %s1482_s5, 2048, %s52_s20, [#allocation5], %s1269_s10, %s1269_s10, %s1270_s11  }
  0x2b   :  { %s1273_s25 = smov [#allocation9]  }
  0x2c   :  { %s75_s26 = sshll.u32 %s1273_s25, 4  ;;  %s76_s26 = int_to_ptr.vmem [resolvable:$true] %s75_s26 }
  0x2d   :  { %s1249_s27 = scalar_lea.vmem %s76_s26, 256  ;;  %p1254_p7 = scmp.lt.s32.totalorder %s76_s26, %s76_s26 }
  0x2e   :  { %p1250_p6 = scmp.ne.s32.totalorder %s76_s26, %s1249_s27  ;;  %p1255_p8 = scmp.lt.s32.totalorder %s1249_s27, %s1249_s27 }
  0x30   :  { %p1256_p9 = por %p1255_p8, %p1254_p7 }
  0x32   :  { %p1257_p10 = pnand %p1256_p9, %p1250_p6 }
  0x34   :  { %1260 = shalt.err (!%p1257_p10)
}
  0x35   :  { %s1274_s1 = smov 128   ;;  %s1275_s28 = smov 8  }
  0x36   :  { %81 = dma.hbm_to_vmem [thread:$0]  %s1484_s7, 256, %s76_s26, [#allocation8], %s1274_s1, %s1274_s1, %s1275_s28  }
  0x37   :  { %1261 = dma.done.wait [#allocation3], 1024  }
  0x38   :  { %1262 = vsyncadd [#allocation3], 4294966272 }
  0x39   :  { %1263 = dma.done.wait [#allocation5], 3072  }
  0x3a   :  { %1264 = vsyncadd [#allocation5], 4294964224 }
  0x3b   :  { %1265 = dma.done.wait [#allocation8], 2304  }
  0x3c   :  { %1266 = vsyncadd [#allocation8], 4294964992  ;;  %v1276_v0 = vmov 0.0   ;;  %vm1277_vm0 = vmmov 0   ;;  %v1105_v1 = vld [vmem:[#allocation2 + $0x38] sm:$0xff]   ;;  %v1106_v2 = vld [vmem:[#allocation2 + $0x30] sm:$0xff]   ;;  %v225_v33 = vlaneseq }
  0x3d   :  { %974 = vmatprep.subr.bf16.mxu0 %v1276_v0  ;;  %990 = vmatprep.mubr.msk.bf16.mxu0 %vm1277_vm0, %v1276_v0  ;;  %v1107_v3 = vld [vmem:[#allocation2 + $0x28] sm:$0xff]   ;;  %v1108_v4 = vld [vmem:[#allocation2 + $0x20] sm:$0xff]   ;;  %v1109_v5 = vld [vmem:[#allocation2 + $0x18] sm:$0xff]  }
  0x3e   :  { %994 = vmatprep.subr.bf16.mxu1 %v1276_v0  ;;  %1010 = vmatprep.mubr.msk.bf16.mxu1 %vm1277_vm0, %v1276_v0  ;;  %v1110_v6 = vld [vmem:[#allocation2 + $0x10] sm:$0xff]   ;;  %v1111_v7 = vld [vmem:[#allocation2 + $0x8] sm:$0xff]   ;;  %v1112_v8 = vld [vmem:[#allocation2] sm:$0xff]   ;;  %v1380_v34 = vshrl.u32 %v225_v33, 7 }
  0x3f   :  { %975 = vmatpush3.bf16.msra.mxu0 %v1105_v1  ;;  %v98_v9 = vld [vmem:[%s1477_s0] sm:$0xf]  ;;  %v1113_v18 = vld [vmem:[#allocation6 + $0x38] sm:$0xff]   ;;  %v1114_v19 = vld [vmem:[#allocation6 + $0x30] sm:$0xff]  }
  0x40   :  { %976 = vmatprep.subr.bf16.mxu0 %v1276_v0  ;;  %v870_v10 = vld [vmem:[%s1479_s2] ss:$0 sm:$0xff]  ;;  %995 = vmatpush3.bf16.msra.mxu1 %v1113_v18  ;;  %v1115_v20 = vld [vmem:[#allocation6 + $0x28] sm:$0xff]   ;;  %v1117_v22 = vld [vmem:[#allocation6 + $0x18] sm:$0xff]   ;;  %v227_v35 = vsub.s32 0, %v1380_v34  ;;  %v232_v37 = vsub.s32 1, %v1380_v34 }
  0x41   :  { %996 = vmatprep.subr.bf16.mxu1 %v1276_v0  ;;  %v1116_v21 = vld [vmem:[#allocation6 + $0x20] sm:$0xff]   ;;  %v1118_v23 = vld [vmem:[#allocation6 + $0x10] sm:$0xff]   ;;  %v1119_v24 = vld [vmem:[#allocation6 + $0x8] sm:$0xff]   ;;  %v254_v46 = vsub.s32 2, %v1380_v34  ;;  %v387_v18 = vsub.s32 5, %v1380_v34 }
  0x42   :  { %v1120_v25 = vld [vmem:[#allocation6] sm:$0xff]   ;;  %v1121_v55 = vld [vmem:[#allocation7 + $0x38] sm:$0xff]   ;;  %v1122_v56 = vld [vmem:[#allocation7 + $0x30] sm:$0xff]  }
  0x43   :  { %977 = vmatpush3.bf16.msra.mxu0 %v1106_v2  ;;  %v1383_v36 = vld [vmem:[#allocation9] sm:$0xff]  ;;  %v1123_v57 = vld [vmem:[#allocation7 + $0x28] sm:$0xff]   ;;  %v1125_v59 = vld [vmem:[#allocation7 + $0x18] sm:$0xff]  }
  0x44   :  { %978 = vmatprep.subr.bf16.mxu0 %v1276_v0  ;;  %997 = vmatpush3.bf16.msra.mxu1 %v1114_v19  ;;  %v228_v39 = vrot.slane %v1383_v36, %v227_v35  ;;  %v233_v42 = vrot.slane %v1383_v36, %v232_v37  ;;  %v255_v47 = vrot.slane %v1383_v36, %v254_v46  ;;  %v1124_v58 = vld [vmem:[#allocation7 + $0x20] sm:$0xff]   ;;  %v1126_v60 = vld [vmem:[#allocation7 + $0x10] sm:$0xff]   ;;  %v1127_v61 = vld [vmem:[#allocation7 + $0x8] sm:$0xff]  }
  0x45   :  { %998 = vmatprep.subr.bf16.mxu1 %v1276_v0  ;;  %v1128_v62 = vld [vmem:[#allocation7] sm:$0xff]   ;;  %v388_v19 = vrot.slane %v1383_v36, %v387_v18  ;;  %v1135_v33 = vld [vmem:[#allocation6 + $0x48] sm:$0xff]  }
  0x47   :  { %979 = vmatpush3.bf16.msra.mxu0 %v1107_v3 }
  0x48   :  { %980 = vmatprep.subr.bf16.mxu0 %v1276_v0  ;;  %999 = vmatpush3.bf16.msra.mxu1 %v1115_v20 }
  0x49   :  { %1000 = vmatprep.subr.bf16.mxu1 %v1276_v0 }
  0x4b   :  { %981 = vmatpush3.bf16.msra.mxu0 %v1108_v4 }
  0x4c   :  { %982 = vmatprep.subr.bf16.mxu0 %v1276_v0  ;;  %1001 = vmatpush3.bf16.msra.mxu1 %v1116_v21 }
  0x4d   :  { %1002 = vmatprep.subr.bf16.mxu1 %v1276_v0 }
  0x4f   :  { %983 = vmatpush3.bf16.msra.mxu0 %v1109_v5 }
  0x50   :  { %984 = vmatprep.subr.bf16.mxu0 %v1276_v0  ;;  %1003 = vmatpush3.bf16.msra.mxu1 %v1117_v22 }
  0x51   :  { %1004 = vmatprep.subr.bf16.mxu1 %v1276_v0 }
  0x53   :  { %985 = vmatpush3.bf16.msra.mxu0 %v1110_v6 }
  0x54   :  { %986 = vmatprep.subr.bf16.mxu0 %v1276_v0  ;;  %1005 = vmatpush3.bf16.msra.mxu1 %v1118_v23 }
  0x55   :  { %1006 = vmatprep.subr.bf16.mxu1 %v1276_v0 }
  0x57   :  { %987 = vmatpush3.bf16.msra.mxu0 %v1111_v7  ;;  %v360_v7 = vsub.s32 3, %v1380_v34 }
  0x58   :  { %988 = vmatprep.subr.bf16.mxu0 %v1276_v0  ;;  %1007 = vmatpush3.bf16.msra.mxu1 %v1119_v24 }
  0x59   :  { %1008 = vmatprep.subr.bf16.mxu1 %v1276_v0 }
  0x5b   :  { %989 = vmatpush3.bf16.msra.mxu0 %v1112_v8  ;;  %v365_v8 = vsub.s32 4, %v1380_v34 }
  0x5c   :  { %1014 = vmatprep.subr.bf16.mxu0 %v1276_v0  ;;  %1009 = vmatpush3.bf16.msra.mxu1 %v1120_v25 }
  0x5d   :  { %1034 = vmatprep.subr.bf16.mxu1 %v1276_v0 }
  0x5e   :  { %991 = vmatmul.mubr.bf16.vlgmr.msra.gmra.mxu0 %v98_v9 }
  0x5f   :  { %1030 = vmatprep.mubr.msk.bf16.mxu0 %vm1277_vm0, %v1276_v0  ;;  %1015 = vmatpush3.bf16.msra.mxu0 %v1121_v55  ;;  %v1137_v55 = vld [vmem:[#allocation7 + $0x78] sm:$0xff]  }
  0x60   :  { %1016 = vmatprep.subr.bf16.mxu0 %v1276_v0 }
  0x63   :  { %1017 = vmatpush3.bf16.msra.mxu0 %v1122_v56 }
  0x64   :  { %1018 = vmatprep.subr.bf16.mxu0 %v1276_v0 }
  0x67   :  { %1019 = vmatpush3.bf16.msra.mxu0 %v1123_v57 }
  0x68   :  { %1020 = vmatprep.subr.bf16.mxu0 %v1276_v0 }
  0x6b   :  { %1021 = vmatpush3.bf16.msra.mxu0 %v1124_v58 }
  0x6c   :  { %1022 = vmatprep.subr.bf16.mxu0 %v1276_v0 }
  0x6f   :  { %1023 = vmatpush3.bf16.msra.mxu0 %v1125_v59 }
  0x70   :  { %1024 = vmatprep.subr.bf16.mxu0 %v1276_v0 }
  0x73   :  { %1025 = vmatpush3.bf16.msra.mxu0 %v1126_v60 }
  0x74   :  { %1026 = vmatprep.subr.bf16.mxu0 %v1276_v0 }
  0x77   :  { %1027 = vmatpush3.bf16.msra.mxu0 %v1127_v61 }
  0x78   :  { %1028 = vmatprep.subr.bf16.mxu0 %v1276_v0 }
  0x7b   :  { %1029 = vmatpush3.bf16.msra.mxu0 %v1128_v62  ;;  %v1138_v62 = vld [vmem:[#allocation7 + $0x70] sm:$0xff]  }
  0x7c   :  { %1054 = vmatprep.subr.bf16.mxu0 %v1276_v0 }
 0x11e   :  { %v204_v11 = vpop.f32.mrf.mxu0 }
 0x11f   :  { %v205_v12 = vadd.f32 %v870_v10, %v204_v11  ;;  %v361_v10 = vrot.slane %v1383_v36, %v360_v7 }
 0x120   :  { %v992_v13 = vpop.f32.mrf.mxu0 }
 0x121   :  { %v210_v14 = vmax.f32 %v205_v12, 0.0  ;;  %v366_v13 = vrot.slane %v1383_v36, %v365_v8  ;;  %v1136_v36 = vld [vmem:[#allocation6 + $0x40] sm:$0xff]  }
 0x122   :  { %v207_v15 = vpop.f32.mrf.mxu0 }
 0x123   :  { %212 = vadd.xlane.f32.xlu0 %v210_v14  ;;  %v215_v17 = vmul.f32 %v210_v14, %v210_v14 }
 0x124   :  { %v993_v16 = vpop.f32.mrf.mxu0 }
 0x127   :  { %216 = vadd.xlane.f32.xlu0 %v215_v17  ;;  %v1129_v17 = vld [vmem:[#allocation6 + $0x78] sm:$0xff]  }
 0x1ac   :  { %v213_v26 = vpop.xlane.xlu0 %212 }
 0x1ad   :  { %v214_v27 = vmul.f32 0.03125, %v213_v26 }
 0x1af   :  { %v219_v29 = vmul.f32 %v214_v27, %v214_v27  ;;  %v221_v38 = vsub.f32 %v210_v14, %v214_v27 }
 0x1b0   :  { %v217_v28 = vpop.xlane.xlu0 %216 }
 0x1b1   :  { %v218_v30 = vmul.f32 0.03125, %v217_v28  ;;  %v1130_v28 = vld [vmem:[#allocation6 + $0x70] sm:$0xff]  }
 0x1b3   :  { %v220_v31 = vsub.f32 %v218_v30, %v219_v29  ;;  %v1131_v29 = vld [vmem:[#allocation6 + $0x68] sm:$0xff]   ;;  %v1132_v30 = vld [vmem:[#allocation6 + $0x60] sm:$0xff]  }
 0x1b5   :  { %v222_v32 = vadd.f32 1e-05, %v220_v31  ;;  %v1133_v31 = vld [vmem:[#allocation6 + $0x58] sm:$0xff]  }
 0x1b7   :  { %1153 = vrsqrt.f32 %v222_v32  ;;  %v1134_v32 = vld [vmem:[#allocation6 + $0x50] sm:$0xff]  }
 0x1c4   :  { %v1154_v40 = vpop.eup %1153 }
 0x1c5   :  { %v224_v41 = vmul.f32 %v1154_v40, %v221_v38 }
 0x1c7   :  { %v229_v43 = vmul.f32 %v228_v39, %v224_v41 }
 0x1c9   :  { %v234_v44 = vadd.f32 %v233_v42, %v229_v43 }
 0x1cb   :  { %v235_v45 = vpack.c.bf16 %v234_v44, %v234_v44 }
 0x1cd   :  { %1011 = vmatmul.mubr.bf16.vlgmr.msra.gmra.mxu1 %v235_v45  ;;  %v1428_v45 = vld [vmem:[#allocation9 + $0x8] sm:$0xff] }
 0x1ce   :  { %1050 = vmatprep.mubr.msk.bf16.mxu1 %vm1277_vm0, %v1276_v0  ;;  %1035 = vmatpush3.bf16.msra.mxu1 %v1129_v17 }
 0x1cf   :  { %1036 = vmatprep.subr.bf16.mxu1 %v1276_v0 }
 0x1d2   :  { %1037 = vmatpush3.bf16.msra.mxu1 %v1130_v28 }
 0x1d3   :  { %1038 = vmatprep.subr.bf16.mxu1 %v1276_v0 }
 0x1d6   :  { %1039 = vmatpush3.bf16.msra.mxu1 %v1131_v29  ;;  %v1151_v29 = vld [vmem:[#allocation4 + $0x8] sm:$0xff]  }
 0x1d7   :  { %1040 = vmatprep.subr.bf16.mxu1 %v1276_v0 }
 0x1da   :  { %1041 = vmatpush3.bf16.msra.mxu1 %v1132_v30  ;;  %v1152_v30 = vld [vmem:[#allocation4] sm:$0xff]  }
 0x1db   :  { %1042 = vmatprep.subr.bf16.mxu1 %v1276_v0 }
 0x1de   :  { %1043 = vmatpush3.bf16.msra.mxu1 %v1133_v31 }
 0x1df   :  { %1044 = vmatprep.subr.bf16.mxu1 %v1276_v0 }
 0x1e2   :  { %1045 = vmatpush3.bf16.msra.mxu1 %v1134_v32 }
 0x1e3   :  { %1046 = vmatprep.subr.bf16.mxu1 %v1276_v0 }
 0x1e6   :  { %1047 = vmatpush3.bf16.msra.mxu1 %v1135_v33 }
 0x1e7   :  { %1048 = vmatprep.subr.bf16.mxu1 %v1276_v0 }
 0x1ea   :  { %1049 = vmatpush3.bf16.msra.mxu1 %v1136_v36 }
 0x1eb   :  { %1074 = vmatprep.subr.bf16.mxu1 %v1276_v0 }
 0x28d   :  { %v338_v48 = vpop.f32.mrf.mxu1 }
 0x28e   :  { %v339_v49 = vadd.f32 %v338_v48, %v255_v47  ;;  %v497_v48 = vrot.slane %v1428_v45, %v227_v35  ;;  %v525_v35 = vrot.slane %v1428_v45, %v254_v46  ;;  %v1140_v46 = vld [vmem:[#allocation7 + $0x60] sm:$0xff]  }
 0x28f   :  { %v1012_v50 = vpop.f32.mrf.mxu1 }
 0x290   :  { %v344_v51 = vadd.f32 %v339_v49, %v210_v14 }
 0x291   :  { %v341_v52 = vpop.f32.mrf.mxu1 }
 0x292   :  { %345 = vadd.xlane.f32.xlu1 %v344_v51  ;;  %v348_v54 = vmul.f32 %v344_v51, %v344_v51 }
 0x293   :  { %v1013_v53 = vpop.f32.mrf.mxu1 }
 0x296   :  { %349 = vadd.xlane.f32.xlu1 %v348_v54 }
 0x31b   :  { %v346_v63 = vpop.xlane.xlu1 %345 }
 0x31c   :  { %v347_v1 = vmul.f32 0.03125, %v346_v63  ;;  %v1139_v63 = vld [vmem:[#allocation7 + $0x68] sm:$0xff]  }
 0x31e   :  { %v352_v3 = vmul.f32 %v347_v1, %v347_v1  ;;  %v354_v9 = vsub.f32 %v344_v51, %v347_v1  ;;  %v1141_v1 = vld [vmem:[#allocation7 + $0x58] sm:$0xff]  }
 0x31f   :  { %v350_v2 = vpop.xlane.xlu1 %349 }
 0x320   :  { %v351_v4 = vmul.f32 0.03125, %v350_v2  ;;  %v1142_v2 = vld [vmem:[#allocation7 + $0x50] sm:$0xff]  }
 0x322   :  { %v353_v5 = vsub.f32 %v351_v4, %v352_v3  ;;  %v1143_v3 = vld [vmem:[#allocation7 + $0x48] sm:$0xff]   ;;  %v1144_v4 = vld [vmem:[#allocation7 + $0x40] sm:$0xff]  }
 0x324   :  { %v355_v6 = vadd.f32 1e-05, %v353_v5  ;;  %v1145_v5 = vld [vmem:[#allocation4 + $0x38] sm:$0xff]  }
 0x326   :  { %1155 = vrsqrt.f32 %v355_v6  ;;  %v1146_v6 = vld [vmem:[#allocation4 + $0x30] sm:$0xff]  }
 0x333   :  { %v1156_v11 = vpop.eup %1155 }
 0x334   :  { %v357_v12 = vmul.f32 %v1156_v11, %v354_v9  ;;  %v1147_v9 = vld [vmem:[#allocation4 + $0x28] sm:$0xff]   ;;  %v1149_v11 = vld [vmem:[#allocation4 + $0x18] sm:$0xff]  }
 0x336   :  { %v362_v14 = vmul.f32 %v361_v10, %v357_v12  ;;  %v1148_v10 = vld [vmem:[#allocation4 + $0x20] sm:$0xff]   ;;  %v1150_v12 = vld [vmem:[#allocation4 + $0x10] sm:$0xff]  }
 0x338   :  { %v367_v15 = vadd.f32 %v366_v13, %v362_v14 }
 0x33a   :  { %v368_v16 = vpack.c.bf16 %v367_v15, %v367_v15 }
 0x33c   :  { %1031 = vmatmul.mubr.bf16.vlgmr.msra.gmra.mxu0 %v368_v16 }
 0x33d   :  { %1070 = vmatprep.mubr.msk.bf16.mxu0 %vm1277_vm0, %v1276_v0  ;;  %1055 = vmatpush3.bf16.msra.mxu0 %v1137_v55 }
 0x33e   :  { %1056 = vmatprep.subr.bf16.mxu0 %v1276_v0 }
 0x341   :  { %1057 = vmatpush3.bf16.msra.mxu0 %v1138_v62 }
 0x342   :  { %1058 = vmatprep.subr.bf16.mxu0 %v1276_v0 }
 0x345   :  { %1059 = vmatpush3.bf16.msra.mxu0 %v1139_v63 }
 0x346   :  { %1060 = vmatprep.subr.bf16.mxu0 %v1276_v0 }
 0x349   :  { %1061 = vmatpush3.bf16.msra.mxu0 %v1140_v46 }
 0x34a   :  { %1062 = vmatprep.subr.bf16.mxu0 %v1276_v0 }
 0x34d   :  { %1063 = vmatpush3.bf16.msra.mxu0 %v1141_v1 }
 0x34e   :  { %1064 = vmatprep.subr.bf16.mxu0 %v1276_v0 }
 0x351   :  { %1065 = vmatpush3.bf16.msra.mxu0 %v1142_v2 }
 0x352   :  { %1066 = vmatprep.subr.bf16.mxu0 %v1276_v0 }
 0x355   :  { %1067 = vmatpush3.bf16.msra.mxu0 %v1143_v3 }
 0x356   :  { %1068 = vmatprep.subr.bf16.mxu0 %v1276_v0 }
 0x359   :  { %1069 = vmatpush3.bf16.msra.mxu0 %v1144_v4 }
 0x3fc   :  { %v471_v20 = vpop.f32.mrf.mxu0 }
 0x3fd   :  { %v472_v21 = vadd.f32 %v471_v20, %v388_v19 }
 0x3fe   :  { %v1032_v22 = vpop.f32.mrf.mxu0 }
 0x3ff   :  { %v477_v23 = vmax.f32 %v472_v21, 0.0  ;;  %v631_v22 = vrot.slane %v1428_v45, %v360_v7  ;;  %v659_v7 = vrot.slane %v1428_v45, %v387_v18 }
 0x400   :  { %v474_v24 = vpop.f32.mrf.mxu0 }
 0x401   :  { %v478_v25 = vadd.f32 %v477_v23, %v344_v51  ;;  %v502_v51 = vrot.slane %v1428_v45, %v232_v37 }
 0x402   :  { %v1033_v26 = vpop.f32.mrf.mxu0 }
 0x403   :  { %481 = vadd.xlane.f32.xlu0 %v478_v25  ;;  %v484_v27 = vmul.f32 %v478_v25, %v478_v25 }
 0x405   :  { %485 = vadd.xlane.f32.xlu1 %v484_v27 }
 0x48c   :  { %v482_v38 = vpop.xlane.xlu0 %481 }
 0x48d   :  { %v483_v39 = vmul.f32 0.03125, %v482_v38 }
 0x48e   :  { %v486_v40 = vpop.xlane.xlu1 %485 }
 0x48f   :  { %v488_v41 = vmul.f32 %v483_v39, %v483_v39  ;;  %v487_v42 = vmul.f32 0.03125, %v486_v40  ;;  %v490_v47 = vsub.f32 %v478_v25, %v483_v39 }
 0x491   :  { %v489_v43 = vsub.f32 %v487_v42, %v488_v41 }
 0x493   :  { %v491_v44 = vadd.f32 1e-05, %v489_v43 }
 0x495   :  { %1157 = vrsqrt.f32 %v491_v44 }
 0x4a2   :  { %v1158_v49 = vpop.eup %1157 }
 0x4a3   :  { %v493_v50 = vmul.f32 %v1158_v49, %v490_v47 }
 0x4a5   :  { %v498_v52 = vmul.f32 %v497_v48, %v493_v50 }
 0x4a7   :  { %v503_v53 = vadd.f32 %v502_v51, %v498_v52 }
 0x4a9   :  { %v504_v54 = vpack.c.bf16 %v503_v53, %v503_v53 }
 0x4ab   :  { %1051 = vmatmul.mubr.bf16.vlgmr.msra.gmra.mxu1 %v504_v54 }
 0x4ac   :  { %1090 = vmatprep.mubr.msk.bf16.mxu1 %vm1277_vm0, %v1276_v0  ;;  %1075 = vmatpush3.bf16.msra.mxu1 %v1145_v5 }
 0x4ad   :  { %1076 = vmatprep.subr.bf16.mxu1 %v1276_v0 }
 0x4b0   :  { %1077 = vmatpush3.bf16.msra.mxu1 %v1146_v6 }
 0x4b1   :  { %1078 = vmatprep.subr.bf16.mxu1 %v1276_v0 }
 0x4b4   :  { %1079 = vmatpush3.bf16.msra.mxu1 %v1147_v9 }
 0x4b5   :  { %1080 = vmatprep.subr.bf16.mxu1 %v1276_v0 }
 0x4b8   :  { %1081 = vmatpush3.bf16.msra.mxu1 %v1148_v10 }
 0x4b9   :  { %1082 = vmatprep.subr.bf16.mxu1 %v1276_v0 }
 0x4bc   :  { %1083 = vmatpush3.bf16.msra.mxu1 %v1149_v11 }
 0x4bd   :  { %1084 = vmatprep.subr.bf16.mxu1 %v1276_v0 }
 0x4c0   :  { %1085 = vmatpush3.bf16.msra.mxu1 %v1150_v12 }
 0x4c1   :  { %1086 = vmatprep.subr.bf16.mxu1 %v1276_v0 }
 0x4c4   :  { %1087 = vmatpush3.bf16.msra.mxu1 %v1151_v29 }
 0x4c5   :  { %1088 = vmatprep.subr.bf16.mxu1 %v1276_v0  ;;  %v911_v0 = vld [vmem:[%s1481_s4] ss:$0 sm:$0xff] }
 0x4c8   :  { %1089 = vmatpush3.bf16.msra.mxu1 %v1152_v30 }
 0x56b   :  { %v608_v56 = vpop.f32.mrf.mxu1 }
 0x56c   :  { %v609_v57 = vadd.f32 %v608_v56, %v525_v35 }
 0x56d   :  { %v1052_v58 = vpop.f32.mrf.mxu1 }
 0x56e   :  { %v1442_v59 = vadd.f32 %v609_v57, %v478_v25  ;;  %v636_v25 = vrot.slane %v1428_v45, %v365_v8 }
 0x56f   :  { %v611_v37 = vpop.f32.mrf.mxu1 }
 0x570   :  { %615 = vadd.xlane.f32.xlu0 %v1442_v59  ;;  %v618_v60 = vmul.f32 %v1442_v59, %v1442_v59 }
 0x571   :  { %v1053_v61 = vpop.f32.mrf.mxu1 }
 0x572   :  { %619 = vadd.xlane.f32.xlu1 %v618_v60 }
 0x5f9   :  { %v616_v13 = vpop.xlane.xlu0 %615 }
 0x5fa   :  { %v617_v14 = vmul.f32 0.03125, %v616_v13 }
 0x5fb   :  { %v620_v15 = vpop.xlane.xlu1 %619 }
 0x5fc   :  { %v622_v16 = vmul.f32 %v617_v14, %v617_v14  ;;  %v621_v17 = vmul.f32 0.03125, %v620_v15  ;;  %v624_v21 = vsub.f32 %v1442_v59, %v617_v14 }
 0x5fe   :  { %v623_v19 = vsub.f32 %v621_v17, %v622_v16 }
 0x600   :  { %v625_v20 = vadd.f32 1e-05, %v623_v19 }
 0x602   :  { %1159 = vrsqrt.f32 %v625_v20 }
 0x60f   :  { %v1160_v23 = vpop.eup %1159 }
 0x610   :  { %v627_v24 = vmul.f32 %v1160_v23, %v624_v21 }
 0x612   :  { %v632_v26 = vmul.f32 %v631_v22, %v627_v24 }
 0x614   :  { %v637_v27 = vadd.f32 %v636_v25, %v632_v26 }
 0x616   :  { %v638_v28 = vpack.c.bf16 %v637_v27, %v637_v27 }
 0x618   :  { %1071 = vmatmul.mubr.bf16.vlgmr.msra.gmra.mxu0 %v638_v28 }
 0x6d8   :  { %v742_v31 = vpop.f32.mrf.mxu0 }
 0x6d9   :  { %v743_v32 = vadd.f32 %v742_v31, %v659_v7 }
 0x6da   :  { %v1072_v33 = vpop.f32.mrf.mxu0 }
 0x6db   :  { %v748_v36 = vmax.f32 %v743_v32, 0.0 }
 0x6dc   :  { %v745_v38 = vpop.f32.mrf.mxu0 }
 0x6dd   :  { %v749_v8 = vadd.f32 %v748_v36, %v1442_v59 }
 0x6de   :  { %v1073_v39 = vpop.f32.mrf.mxu0 }
 0x6df   :  { %v750_v40 = vpack.c.bf16 %v749_v8, %v749_v8 }
 0x6e1   :  { %1091 = vmatmul.mubr.bf16.vlgmr.msra.gmra.mxu1 %v750_v40 }
 0x7a1   :  { %v856_v41 = vpop.f32.mrf.mxu1 }
 0x7a2   :  { %v857_v42 = vadd.f32 %v911_v0, %v856_v41 }
 0x7a3   :  { %v1092_v43 = vpop.f32.mrf.mxu1 }
 0x7a4   :  { %862 = vst [vmem:[%s1485_s8] sm:$0xff] %v857_v42 }
 0x7a5   :  { %v859_v34 = vpop.f32.mrf.mxu1 }
 0x7a7   :  { %v1093_v18 = vpop.f32.mrf.mxu1 }
 0x7a8   :  { %867 = vsyncpa [#allocation3], 1 }
 0x7a9   :  { %868 = vsyncpa [#allocation5], 1 }
 0x7aa   :  { %869 = vsyncpa [#allocation8], 1 }

</bundles_post_ra>
